<compile_context>
chip_gen: v7x
topology: tpu7x:2x2x1
jax: 0.10.0
libtpu: 0.0.40
codegen_flags: <defaults>
</compile_context>

<pallas_src>
import functools

import jax
import jax.numpy as jnp
from jax.experimental import pallas as pl
from jax.experimental.pallas import tpu as pltpu

HID = 64      # hidden width 50 zero-padded to 64
IN_DIM = 2    # VAE input features


def _round_up(n, m):
    return ((n + m - 1) // m) * m


def _vae_kernel(x_ref, eps_ref,
                w1_ref, b1_ref, w2_ref, b2_ref,
                wh_ref, bh_ref,
                w3_ref, b3_ref, w4_ref, b4_ref,
                w5_ref, b5_ref,
                mu_ref, lv_ref, out_ref, *, latent_dim):
    L = latent_dim
    cdt = w2_ref.dtype                       # MXU compute dtype (bf16 or f32)

    x = x_ref[...]                           # (TB, 2)  f32
    eps = eps_ref[...]                       # (TB, L)  f32

    # ---- encoder layer 1: Linear(2, 50->64) + ReLU on the VPU (K=2, skip MXU)
    h = x[:, 0:1] * w1_ref[0:1, :] + x[:, 1:2] * w1_ref[1:2, :] + b1_ref[...]
    h = jnp.maximum(h, 0.0)

    # ---- encoder layer 2: Linear(64, 64) + ReLU (MXU, f32 accumulation) ----
    h = jnp.dot(h.astype(cdt), w2_ref[...],
                preferred_element_type=jnp.float32) + b2_ref[...]
    h = jnp.maximum(h, 0.0)

    # ---- fused mu/logvar heads: (64, 2L) weight; mu @ [0,L), logvar @ [L,2L)
    heads = jnp.dot(h.astype(cdt), wh_ref[...],
                    preferred_element_type=jnp.float32) + bh_ref[...]
    mu = heads[:, 0:L]
    logvar = heads[:, L:2 * L]

    # ---- reparameterization: z = mu + eps * exp(0.5 * logvar)  (f32) ----
    z = mu + eps * jnp.exp(0.5 * logvar)

    # ---- decoder: Linear(L,64)+ReLU, Linear(64,64)+ReLU, Linear(64,2) ----
    d = jnp.dot(z.astype(cdt), w3_ref[...],
                preferred_element_type=jnp.float32) + b3_ref[...]
    d = jnp.maximum(d, 0.0)
    d = jnp.dot(d.astype(cdt), w4_ref[...],
                preferred_element_type=jnp.float32) + b4_ref[...]
    d = jnp.maximum(d, 0.0)
    recon = jnp.dot(d.astype(cdt), w5_ref[...],
                    preferred_element_type=jnp.float32) + b5_ref[...]

    mu_ref[...] = mu
    lv_ref[...] = logvar
    out_ref[...] = recon


def pack_params(p, L, *, use_bf16=True):
    """Zero-pad hidden 50->64, fuse mu|logvar heads, cast MXU weights.

    Call once per parameter set (outside the forward path) and reuse.
    """
    mm_dtype = jnp.bfloat16 if use_bf16 else jnp.float32

    def pad(a, shape, dtype=jnp.float32):
        out = jnp.zeros(shape, jnp.float32).at[:a.shape[0], :a.shape[1]].set(a)
        return out.astype(dtype)

    w1 = pad(p["w1"], (IN_DIM, HID))              # (2,50)  -> (2,64)   f32 (VPU)
    b1 = pad(p["b1"], (1, HID))
    w2 = pad(p["w2"], (HID, HID), mm_dtype)       # (50,50) -> (64,64)
    b2 = pad(p["b2"], (1, HID))

    wh = jnp.zeros((HID, 2 * L), jnp.float32)     # fused mu | logvar head
    wh = wh.at[:p["w_mu"].shape[0], 0:L].set(p["w_mu"])
    wh = wh.at[:p["w_lv"].shape[0], L:2 * L].set(p["w_lv"])
    wh = wh.astype(mm_dtype)
    bh = jnp.concatenate([p["b_mu"], p["b_lv"]], axis=1).astype(jnp.float32)

    w3 = pad(p["w3"], (L, HID), mm_dtype)         # (L,50)  -> (L,64)
    b3 = pad(p["b3"], (1, HID))
    w4 = pad(p["w4"], (HID, HID), mm_dtype)
    b4 = pad(p["b4"], (1, HID))
    w5 = pad(p["w5"], (HID, IN_DIM), mm_dtype)    # (50,2)  -> (64,2)
    b5 = p["b5"].astype(jnp.float32)

    return (w1, b1, w2, b2, wh, bh, w3, b3, w4, b4, w5, b5)


def vae_forward_pallas(x, eps, packed_params, *, block_rows=2048):
    """Forward pass.  `packed_params` must come from pack_params()."""
    B = x.shape[0]
    L = eps.shape[1]
    pp = packed_params

    # Batch tile: multiple of 8 sublanes, capped at block_rows, and chosen so
    # the parallel grid has >= 2 steps when the batch allows it (v7x megacore).
    TB = min(block_rows, max(8, _round_up(pl.cdiv(B, 2), 8)))
    Bp = _round_up(B, TB)

    x = x.astype(jnp.float32)
    eps = eps.astype(jnp.float32)
    if Bp != B:
        x = jnp.pad(x, ((0, Bp - B), (0, 0)))
        eps = jnp.pad(eps, ((0, Bp - B), (0, 0)))

    grid = (Bp // TB,)
    row2 = pl.BlockSpec((TB, IN_DIM), lambda i: (i, 0))
    rowL = pl.BlockSpec((TB, L), lambda i: (i, 0))

    def resident(a):   # weights/biases: same block every step -> stay in VMEM
        return pl.BlockSpec(a.shape, lambda i: (0, 0))

    flops = 2 * Bp * (IN_DIM * HID + HID * HID + HID * 2 * L
                      + L * HID + HID * HID + HID * IN_DIM)
    io_bytes = Bp * (IN_DIM + L + 2 * L + IN_DIM) * 4
    param_bytes = sum(int(a.size) * a.dtype.itemsize for a in pp)
    cost = pl.CostEstimate(flops=flops,
                           transcendentals=Bp * L,
                           bytes_accessed=io_bytes + param_bytes)

    mu, logvar, out = pl.pallas_call(
        functools.partial(_vae_kernel, latent_dim=L),
        out_shape=(jax.ShapeDtypeStruct((Bp, L), jnp.float32),
                   jax.ShapeDtypeStruct((Bp, L), jnp.float32),
                   jax.ShapeDtypeStruct((Bp, IN_DIM), jnp.float32)),
        grid=grid,
        in_specs=[row2, rowL] + [resident(a) for a in pp],
        out_specs=(rowL, rowL, row2),
        compiler_params=pltpu.CompilerParams(
            dimension_semantics=("parallel",)),
        cost_estimate=cost,
    )(x, eps, *pp)

    if Bp != B:
        mu, logvar, out = mu[:B], logvar[:B], out[:B]
    return mu, logvar, out


def init_params(key, latent_dim):
    """Deterministic synthetic parameters (not a checkpoint load)."""
    def linear(key, fan_in, fan_out):
        kw, kb = jax.random.split(key)
        bound = 1.0 / jnp.sqrt(fan_in)  # PyTorch default init range
        w = jax.random.uniform(kw, (fan_in, fan_out), jnp.float32, -bound, bound)
        b = jax.random.uniform(kb, (1, fan_out), jnp.float32, -bound, bound)
        return w, b

    keys = jax.random.split(key, 7)
    w1, b1 = linear(keys[0], 2, 50)
    w2, b2 = linear(keys[1], 50, 50)
    w_mu, b_mu = linear(keys[2], 50, latent_dim)
    w_lv, b_lv = linear(keys[3], 50, latent_dim)
    w3, b3 = linear(keys[4], latent_dim, 50)
    w4, b4 = linear(keys[5], 50, 50)
    w5, b5 = linear(keys[6], 50, 2)
    return dict(w1=w1, b1=b1, w2=w2, b2=b2,
                w_mu=w_mu, b_mu=b_mu, w_lv=w_lv, b_lv=b_lv,
                w3=w3, b3=b3, w4=w4, b4=b4, w5=w5, b5=b5)


def vae_forward_ref(x, eps, p):
    """Pure-JAX f32 reference matching the PyTorch forward semantics."""
    h = jnp.maximum(x @ p["w1"] + p["b1"], 0.0)
    h = jnp.maximum(h @ p["w2"] + p["b2"], 0.0)
    mu = h @ p["w_mu"] + p["b_mu"]
    logvar = h @ p["w_lv"] + p["b_lv"]
    z = mu + eps * jnp.exp(0.5 * logvar)
    d = jnp.maximum(z @ p["w3"] + p["b3"], 0.0)
    d = jnp.maximum(d @ p["w4"] + p["b4"], 0.0)
    out = d @ p["w5"] + p["b5"]
    return mu, logvar, out


def _check(B, latent_dim, key, params, *, block_rows=2048, use_bf16=False,
           tol=1e-5):
    pp = pack_params(params, latent_dim, use_bf16=use_bf16)   # packed once

    k_x, k_eps = jax.random.split(jax.random.fold_in(key, B))
    x = jax.random.normal(k_x, (B, 2), jnp.float32)
    eps = jax.random.normal(k_eps, (B, latent_dim), jnp.float32)

    mu, logvar, out = jax.block_until_ready(
        vae_forward_pallas(x, eps, pp, block_rows=block_rows))
    mu_r, logvar_r, out_r = vae_forward_ref(x, eps, params)

    assert jnp.allclose(mu, mu_r, atol=tol, rtol=tol), "mu mismatch"
    assert jnp.allclose(logvar, logvar_r, atol=tol, rtol=tol), "logvar mismatch"
    assert jnp.allclose(out, out_r, atol=tol, rtol=tol), "out mismatch"


if __name__ == "__main__":
    key = jax.random.PRNGKey(0)
    k_param, k_data = jax.random.split(key)

    latent_dim = 16
    params = init_params(k_param, latent_dim)

    # Exact-math (f32 MXU) checks: single-tile grid and a forced multi-tile grid.
    _check(8, latent_dim, k_data, params, use_bf16=False, tol=1e-5)
    _check(24, latent_dim, k_data, params, block_rows=8, use_bf16=False, tol=1e-5)

    # Performance path: bf16 MXU operands, large batch, TB=2048 x 2 grid steps.
    _check(4096, latent_dim, k_data, params, use_bf16=True, tol=5e-2)

    print("KERNEL_OK")
</pallas_src>

<mosaic_0001>
module attributes {stable_mosaic.version = 11 : i64} {
  func.func @_vae_kernel(%arg0: i32, %arg1: memref<8x2xf32, #tpu.memory_space<vmem>>, %arg2: memref<8x16xf32, #tpu.memory_space<vmem>>, %arg3: memref<2x64xf32, #tpu.memory_space<vmem>>, %arg4: memref<1x64xf32, #tpu.memory_space<vmem>>, %arg5: memref<64x64xf32, #tpu.memory_space<vmem>>, %arg6: memref<1x64xf32, #tpu.memory_space<vmem>>, %arg7: memref<64x32xf32, #tpu.memory_space<vmem>>, %arg8: memref<1x32xf32, #tpu.memory_space<vmem>>, %arg9: memref<16x64xf32, #tpu.memory_space<vmem>>, %arg10: memref<1x64xf32, #tpu.memory_space<vmem>>, %arg11: memref<64x64xf32, #tpu.memory_space<vmem>>, %arg12: memref<1x64xf32, #tpu.memory_space<vmem>>, %arg13: memref<64x2xf32, #tpu.memory_space<vmem>>, %arg14: memref<1x2xf32, #tpu.memory_space<vmem>>, %arg15: memref<8x16xf32, #tpu.memory_space<vmem>>, %arg16: memref<8x16xf32, #tpu.memory_space<vmem>>, %arg17: memref<8x2xf32, #tpu.memory_space<vmem>>) attributes {dimension_semantics = [#tpu.dimension_semantics<parallel>], iteration_bounds = array<i64: 1>, scalar_prefetch = 0 : i64, scratch_operands = 0 : i64, tpu.core_type = #tpu.core_type<tc>, window_params = [{transform_indices = @transform_0, window_bounds = array<i64: 8, 2>}, {transform_indices = @transform_1, window_bounds = array<i64: 8, 16>}, {pipeline_mode = #tpu.pipeline_mode<synchronous>, transform_indices = @transform_2, window_bounds = array<i64: 2, 64>}, {pipeline_mode = #tpu.pipeline_mode<synchronous>, transform_indices = @transform_3, window_bounds = array<i64: 1, 64>}, {pipeline_mode = #tpu.pipeline_mode<synchronous>, transform_indices = @transform_4, window_bounds = array<i64: 64, 64>}, {pipeline_mode = #tpu.pipeline_mode<synchronous>, transform_indices = @transform_5, window_bounds = array<i64: 1, 64>}, {pipeline_mode = #tpu.pipeline_mode<synchronous>, transform_indices = @transform_6, window_bounds = array<i64: 64, 32>}, {pipeline_mode = #tpu.pipeline_mode<synchronous>, transform_indices = @transform_7, window_bounds = array<i64: 1, 32>}, {pipeline_mode = #tpu.pipeline_mode<synchronous>, transform_indices = @transform_8, window_bounds = array<i64: 16, 64>}, {pipeline_mode = #tpu.pipeline_mode<synchronous>, transform_indices = @transform_9, window_bounds = array<i64: 1, 64>}, {pipeline_mode = #tpu.pipeline_mode<synchronous>, transform_indices = @transform_10, window_bounds = array<i64: 64, 64>}, {pipeline_mode = #tpu.pipeline_mode<synchronous>, transform_indices = @transform_11, window_bounds = array<i64: 1, 64>}, {pipeline_mode = #tpu.pipeline_mode<synchronous>, transform_indices = @transform_12, window_bounds = array<i64: 64, 2>}, {pipeline_mode = #tpu.pipeline_mode<synchronous>, transform_indices = @transform_13, window_bounds = array<i64: 1, 2>}, {transform_indices = @transform_14, window_bounds = array<i64: 8, 16>}, {transform_indices = @transform_15, window_bounds = array<i64: 8, 16>}, {transform_indices = @transform_16, window_bounds = array<i64: 8, 2>}]} {
    %c0 = arith.constant 0 : index
    %c0_0 = arith.constant 0 : index
    %0 = vector.load %arg1[%c0, %c0_0] : memref<8x2xf32, #tpu.memory_space<vmem>>, vector<8x2xf32>
    %c0_1 = arith.constant 0 : index
    %c0_2 = arith.constant 0 : index
    %1 = vector.load %arg2[%c0_1, %c0_2] : memref<8x16xf32, #tpu.memory_space<vmem>>, vector<8x16xf32>
    %2 = vector.extract_strided_slice %0 {offsets = [0, 0], sizes = [8, 1], strides = [1, 1]} : vector<8x2xf32> to vector<8x1xf32>
    %c0_3 = arith.constant 0 : index
    %c0_4 = arith.constant 0 : index
    %3 = vector.load %arg3[%c0_3, %c0_4] : memref<2x64xf32, #tpu.memory_space<vmem>>, vector<1x64xf32>
    %4 = vector.broadcast %2 : vector<8x1xf32> to vector<8x64xf32>
    %5 = vector.broadcast %3 : vector<1x64xf32> to vector<8x64xf32>
    %6 = arith.mulf %4, %5 : vector<8x64xf32>
    %7 = vector.extract_strided_slice %0 {offsets = [0, 1], sizes = [8, 1], strides = [1, 1]} : vector<8x2xf32> to vector<8x1xf32>
    %c1 = arith.constant 1 : index
    %c0_5 = arith.constant 0 : index
    %8 = vector.load %arg3[%c1, %c0_5] : memref<2x64xf32, #tpu.memory_space<vmem>>, vector<1x64xf32>
    %9 = vector.broadcast %7 : vector<8x1xf32> to vector<8x64xf32>
    %10 = vector.broadcast %8 : vector<1x64xf32> to vector<8x64xf32>
    %11 = arith.mulf %9, %10 : vector<8x64xf32>
    %12 = arith.addf %6, %11 : vector<8x64xf32>
    %c0_6 = arith.constant 0 : index
    %c0_7 = arith.constant 0 : index
    %13 = vector.load %arg4[%c0_6, %c0_7] : memref<1x64xf32, #tpu.memory_space<vmem>>, vector<1x64xf32>
    %14 = vector.broadcast %13 : vector<1x64xf32> to vector<8x64xf32>
    %15 = arith.addf %12, %14 : vector<8x64xf32>
    %cst = arith.constant 0.000000e+00 : f32
    %16 = vector.broadcast %cst : f32 to vector<8x64xf32>
    %17 = arith.maximumf %15, %16 : vector<8x64xf32>
    %c0_8 = arith.constant 0 : index
    %c0_9 = arith.constant 0 : index
    %18 = vector.load %arg5[%c0_8, %c0_9] : memref<64x64xf32, #tpu.memory_space<vmem>>, vector<64x64xf32>
    %cst_10 = arith.constant dense<0.000000e+00> : vector<8x64xf32>
    %19 = tpu.matmul %17, %18, %cst_10 {dimension_numbers = #tpu.dot_dimension_numbers<[1], [0], [0], [1], [0, 0, 1, 1], [], []>} : vector<8x64xf32>, vector<64x64xf32>, vector<8x64xf32> -> vector<8x64xf32>
    %c0_11 = arith.constant 0 : index
    %c0_12 = arith.constant 0 : index
    %20 = vector.load %arg6[%c0_11, %c0_12] : memref<1x64xf32, #tpu.memory_space<vmem>>, vector<1x64xf32>
    %21 = vector.broadcast %20 : vector<1x64xf32> to vector<8x64xf32>
    %22 = arith.addf %19, %21 : vector<8x64xf32>
    %cst_13 = arith.constant 0.000000e+00 : f32
    %23 = vector.broadcast %cst_13 : f32 to vector<8x64xf32>
    %24 = arith.maximumf %22, %23 : vector<8x64xf32>
    %c0_14 = arith.constant 0 : index
    %c0_15 = arith.constant 0 : index
    %25 = vector.load %arg7[%c0_14, %c0_15] : memref<64x32xf32, #tpu.memory_space<vmem>>, vector<64x32xf32>
    %cst_16 = arith.constant dense<0.000000e+00> : vector<8x32xf32>
    %26 = tpu.matmul %24, %25, %cst_16 {dimension_numbers = #tpu.dot_dimension_numbers<[1], [0], [0], [1], [0, 0, 1, 1], [], []>} : vector<8x64xf32>, vector<64x32xf32>, vector<8x32xf32> -> vector<8x32xf32>
    %c0_17 = arith.constant 0 : index
    %c0_18 = arith.constant 0 : index
    %27 = vector.load %arg8[%c0_17, %c0_18] : memref<1x32xf32, #tpu.memory_space<vmem>>, vector<1x32xf32>
    %28 = vector.broadcast %27 : vector<1x32xf32> to vector<8x32xf32>
    %29 = arith.addf %26, %28 : vector<8x32xf32>
    %30 = vector.extract_strided_slice %29 {offsets = [0, 0], sizes = [8, 16], strides = [1, 1]} : vector<8x32xf32> to vector<8x16xf32>
    %31 = vector.extract_strided_slice %29 {offsets = [0, 16], sizes = [8, 16], strides = [1, 1]} : vector<8x32xf32> to vector<8x16xf32>
    %cst_19 = arith.constant 5.000000e-01 : f32
    %32 = vector.broadcast %cst_19 : f32 to vector<8x16xf32>
    %33 = arith.mulf %32, %31 : vector<8x16xf32>
    %34 = math.exp %33 : vector<8x16xf32>
    %35 = arith.mulf %1, %34 : vector<8x16xf32>
    %36 = arith.addf %30, %35 : vector<8x16xf32>
    %c0_20 = arith.constant 0 : index
    %c0_21 = arith.constant 0 : index
    %37 = vector.load %arg9[%c0_20, %c0_21] : memref<16x64xf32, #tpu.memory_space<vmem>>, vector<16x64xf32>
    %cst_22 = arith.constant dense<0.000000e+00> : vector<8x64xf32>
    %38 = tpu.matmul %36, %37, %cst_22 {dimension_numbers = #tpu.dot_dimension_numbers<[1], [0], [0], [1], [0, 0, 1, 1], [], []>} : vector<8x16xf32>, vector<16x64xf32>, vector<8x64xf32> -> vector<8x64xf32>
    %c0_23 = arith.constant 0 : index
    %c0_24 = arith.constant 0 : index
    %39 = vector.load %arg10[%c0_23, %c0_24] : memref<1x64xf32, #tpu.memory_space<vmem>>, vector<1x64xf32>
    %40 = vector.broadcast %39 : vector<1x64xf32> to vector<8x64xf32>
    %41 = arith.addf %38, %40 : vector<8x64xf32>
    %cst_25 = arith.constant 0.000000e+00 : f32
    %42 = vector.broadcast %cst_25 : f32 to vector<8x64xf32>
    %43 = arith.maximumf %41, %42 : vector<8x64xf32>
    %c0_26 = arith.constant 0 : index
    %c0_27 = arith.constant 0 : index
    %44 = vector.load %arg11[%c0_26, %c0_27] : memref<64x64xf32, #tpu.memory_space<vmem>>, vector<64x64xf32>
    %cst_28 = arith.constant dense<0.000000e+00> : vector<8x64xf32>
    %45 = tpu.matmul %43, %44, %cst_28 {dimension_numbers = #tpu.dot_dimension_numbers<[1], [0], [0], [1], [0, 0, 1, 1], [], []>} : vector<8x64xf32>, vector<64x64xf32>, vector<8x64xf32> -> vector<8x64xf32>
    %c0_29 = arith.constant 0 : index
    %c0_30 = arith.constant 0 : index
    %46 = vector.load %arg12[%c0_29, %c0_30] : memref<1x64xf32, #tpu.memory_space<vmem>>, vector<1x64xf32>
    %47 = vector.broadcast %46 : vector<1x64xf32> to vector<8x64xf32>
    %48 = arith.addf %45, %47 : vector<8x64xf32>
    %cst_31 = arith.constant 0.000000e+00 : f32
    %49 = vector.broadcast %cst_31 : f32 to vector<8x64xf32>
    %50 = arith.maximumf %48, %49 : vector<8x64xf32>
    %c0_32 = arith.constant 0 : index
    %c0_33 = arith.constant 0 : index
    %51 = vector.load %arg13[%c0_32, %c0_33] : memref<64x2xf32, #tpu.memory_space<vmem>>, vector<64x2xf32>
    %cst_34 = arith.constant dense<0.000000e+00> : vector<8x2xf32>
    %52 = tpu.matmul %50, %51, %cst_34 {dimension_numbers = #tpu.dot_dimension_numbers<[1], [0], [0], [1], [0, 0, 1, 1], [], []>} : vector<8x64xf32>, vector<64x2xf32>, vector<8x2xf32> -> vector<8x2xf32>
    %c0_35 = arith.constant 0 : index
    %c0_36 = arith.constant 0 : index
    %53 = vector.load %arg14[%c0_35, %c0_36] : memref<1x2xf32, #tpu.memory_space<vmem>>, vector<1x2xf32>
    %54 = vector.broadcast %53 : vector<1x2xf32> to vector<8x2xf32>
    %55 = arith.addf %52, %54 : vector<8x2xf32>
    %c0_37 = arith.constant 0 : index
    %c0_38 = arith.constant 0 : index
    %56 = vector.load %arg15[%c0_37, %c0_38] : memref<8x16xf32, #tpu.memory_space<vmem>>, vector<8x16xf32>
    tpu.vector_store %arg15[%c0_37, %c0_38], %30 {strides = array<i32>} : memref<8x16xf32, #tpu.memory_space<vmem>>, vector<8x16xf32>,
    %c0_39 = arith.constant 0 : index
    %c0_40 = arith.constant 0 : index
    %57 = vector.load %arg16[%c0_39, %c0_40] : memref<8x16xf32, #tpu.memory_space<vmem>>, vector<8x16xf32>
    tpu.vector_store %arg16[%c0_39, %c0_40], %31 {strides = array<i32>} : memref<8x16xf32, #tpu.memory_space<vmem>>, vector<8x16xf32>,
    %c0_41 = arith.constant 0 : index
    %c0_42 = arith.constant 0 : index
    %58 = vector.load %arg17[%c0_41, %c0_42] : memref<8x2xf32, #tpu.memory_space<vmem>>, vector<8x2xf32>
    tpu.vector_store %arg17[%c0_41, %c0_42], %55 {strides = array<i32>} : memref<8x2xf32, #tpu.memory_space<vmem>>, vector<8x2xf32>,
    return
  }
  func.func @transform_0(%arg0: i32) -> (i32, i32) {
    %c0_i32 = arith.constant 0 : i32
    %c0_i32_0 = arith.constant 0 : i32
    return %arg0, %c0_i32 : i32, i32
  }
  func.func @transform_1(%arg0: i32) -> (i32, i32) {
    %c0_i32 = arith.constant 0 : i32
    %c0_i32_0 = arith.constant 0 : i32
    return %arg0, %c0_i32 : i32, i32
  }
  func.func @transform_2(%arg0: i32) -> (i32, i32) {
    %c0_i32 = arith.constant 0 : i32
    %c0_i32_0 = arith.constant 0 : i32
    %c0_i32_1 = arith.constant 0 : i32
    return %c0_i32, %c0_i32_0 : i32, i32
  }
  func.func @transform_3(%arg0: i32) -> (i32, i32) {
    %c0_i32 = arith.constant 0 : i32
    %c0_i32_0 = arith.constant 0 : i32
    %c0_i32_1 = arith.constant 0 : i32
    return %c0_i32, %c0_i32_0 : i32, i32
  }
  func.func @transform_4(%arg0: i32) -> (i32, i32) {
    %c0_i32 = arith.constant 0 : i32
    %c0_i32_0 = arith.constant 0 : i32
    %c0_i32_1 = arith.constant 0 : i32
    return %c0_i32, %c0_i32_0 : i32, i32
  }
  func.func @transform_5(%arg0: i32) -> (i32, i32) {
    %c0_i32 = arith.constant 0 : i32
    %c0_i32_0 = arith.constant 0 : i32
    %c0_i32_1 = arith.constant 0 : i32
    return %c0_i32, %c0_i32_0 : i32, i32
  }
  func.func @transform_6(%arg0: i32) -> (i32, i32) {
    %c0_i32 = arith.constant 0 : i32
    %c0_i32_0 = arith.constant 0 : i32
    %c0_i32_1 = arith.constant 0 : i32
    return %c0_i32, %c0_i32_0 : i32, i32
  }
  func.func @transform_7(%arg0: i32) -> (i32, i32) {
    %c0_i32 = arith.constant 0 : i32
    %c0_i32_0 = arith.constant 0 : i32
    %c0_i32_1 = arith.constant 0 : i32
    return %c0_i32, %c0_i32_0 : i32, i32
  }
  func.func @transform_8(%arg0: i32) -> (i32, i32) {
    %c0_i32 = arith.constant 0 : i32
    %c0_i32_0 = arith.constant 0 : i32
    %c0_i32_1 = arith.constant 0 : i32
    return %c0_i32, %c0_i32_0 : i32, i32
  }
  func.func @transform_9(%arg0: i32) -> (i32, i32) {
    %c0_i32 = arith.constant 0 : i32
    %c0_i32_0 = arith.constant 0 : i32
    %c0_i32_1 = arith.constant 0 : i32
    return %c0_i32, %c0_i32_0 : i32, i32
  }
  func.func @transform_10(%arg0: i32) -> (i32, i32) {
    %c0_i32 = arith.constant 0 : i32
    %c0_i32_0 = arith.constant 0 : i32
    %c0_i32_1 = arith.constant 0 : i32
    return %c0_i32, %c0_i32_0 : i32, i32
  }
  func.func @transform_11(%arg0: i32) -> (i32, i32) {
    %c0_i32 = arith.constant 0 : i32
    %c0_i32_0 = arith.constant 0 : i32
    %c0_i32_1 = arith.constant 0 : i32
    return %c0_i32, %c0_i32_0 : i32, i32
  }
  func.func @transform_12(%arg0: i32) -> (i32, i32) {
    %c0_i32 = arith.constant 0 : i32
    %c0_i32_0 = arith.constant 0 : i32
    %c0_i32_1 = arith.constant 0 : i32
    return %c0_i32, %c0_i32_0 : i32, i32
  }
  func.func @transform_13(%arg0: i32) -> (i32, i32) {
    %c0_i32 = arith.constant 0 : i32
    %c0_i32_0 = arith.constant 0 : i32
    %c0_i32_1 = arith.constant 0 : i32
    return %c0_i32, %c0_i32_0 : i32, i32
  }
  func.func @transform_14(%arg0: i32) -> (i32, i32) {
    %c0_i32 = arith.constant 0 : i32
    %c0_i32_0 = arith.constant 0 : i32
    return %arg0, %c0_i32 : i32, i32
  }
  func.func @transform_15(%arg0: i32) -> (i32, i32) {
    %c0_i32 = arith.constant 0 : i32
    %c0_i32_0 = arith.constant 0 : i32
    return %arg0, %c0_i32 : i32, i32
  }
  func.func @transform_16(%arg0: i32) -> (i32, i32) {
    %c0_i32 = arith.constant 0 : i32
    %c0_i32_0 = arith.constant 0 : i32
    return %arg0, %c0_i32 : i32, i32
  }
}

</mosaic_0001>

<bundles_post_ra>
// kernel: tpu_custom_call.1
= control target key start
LH: loop header
LB: loop body
LE: loop exit
PB: predicated region body
PF: predicated region fallthrough
CT: control target
= control target key end

     0   :  { %s1105_s0 = inlined_call_operand.vmem [shape: f32[8,2], index: 0, kind: input, shape index: {}]   ;;  %s1106_s1 = inlined_call_operand.vmem [shape: f32[8,16], index: 1, kind: input, shape index: {}]   ;;  %s1107_s2 = inlined_call_operand.vmem [shape: f32[2,64], index: 2, kind: input, shape index: {}]   ;;  %s1108_s3 = inlined_call_operand.vmem [shape: f32[1,64], index: 3, kind: input, shape index: {}]   ;;  %s1109_s4 = inlined_call_operand.vmem [shape: f32[64,64], index: 4, kind: input, shape index: {}]   ;;  %s1110_s5 = inlined_call_operand.vmem [shape: f32[1,64], index: 5, kind: input, shape index: {}]   ;;  %s1111_s6 = inlined_call_operand.vmem [shape: f32[64,32], index: 6, kind: input, shape index: {}]   ;;  %s1112_s7 = inlined_call_operand.vmem [shape: f32[1,32], index: 7, kind: input, shape index: {}]   ;;  %s1113_s8 = inlined_call_operand.vmem [shape: f32[16,64], index: 8, kind: input, shape index: {}]   ;;  %s1114_s9 = inlined_call_operand.vmem [shape: f32[1,64], index: 9, kind: input, shape index: {}]   ;;  %s1115_s10 = inlined_call_operand.vmem [shape: f32[64,64], index: 10, kind: input, shape index: {}]   ;;  %s1116_s11 = inlined_call_operand.vmem [shape: f32[1,64], index: 11, kind: input, shape index: {}]   ;;  %s1117_s12 = inlined_call_operand.vmem [shape: f32[64,2], index: 12, kind: input, shape index: {}]   ;;  %s1118_s13 = inlined_call_operand.vmem [shape: f32[1,2], index: 13, kind: input, shape index: {}]   ;;  %s1119_s14 = inlined_call_operand.hbm [shape: f32[8,16], index: 14, kind: output, shape index: {0}]   ;;  %s1120_s15 = inlined_call_operand.hbm [shape: f32[8,16], index: 15, kind: output, shape index: {1}]   ;;  %s1121_s16 = inlined_call_operand.vmem [shape: f32[8,2], index: 16, kind: output, shape index: {2}]  }
   0x1   :  { %1122 = sst [smem:[#allocation8_spill]] %s1105_s0 }
   0x2   :  { %22 = vsyncpa [#allocation3], 0  ;;  %s1123_s23 = sld [smem:[#allocation8_spill]]  ;;  %v85_v1 = vld [vmem:[%s1109_s4] sm:$0xff]  ;;  %v86_v2 = vld [vmem:[%s1109_s4 + $0x8] sm:$0xff]  ;;  %v819_v3 = vmov 0  }
   0x3   :  { %767 = vset.pattern.permute.xlu0 %v819_v3  ;;  %v820_v4 = vmov 0.0|0.0   ;;  %v709_v5 = vpack.c.bf16 %v86_v2, %v85_v1  ;;  %v87_v6 = vld [vmem:[%s1109_s4 + $0x10] sm:$0xff]  ;;  %v88_v7 = vld [vmem:[%s1109_s4 + $0x18] sm:$0xff] }
   0x4   :  { %708 = vmatprep.subr.bf16.mxu0 %v820_v4  ;;  %720 = vmatprep.subr.bf16.mxu1 %v820_v4 }
   0x8   :  { %v52_v0 = vld [vmem:[%s1123_s23] sm:$0xff] }
   0x9   :  { %57 = vperm.xlu0 %767, %v52_v0  }
   0xa   :  { %23 = vsyncpa [#allocation5], 0  ;;  %710 = vmatpush3.bf16.msra.mxu0 %v709_v5  ;;  %v712_v8 = vpack.c.bf16 %v88_v7, %v87_v6  ;;  %v89_v9 = vld [vmem:[%s1109_s4 + $0x20] sm:$0xff]  ;;  %v90_v10 = vld [vmem:[%s1109_s4 + $0x28] sm:$0xff]  ;;  %v821_v11 = vmov 1   ;;  %vm822_vm0 = vmmov 0  }
   0xb   :  { %711 = vmatprep.subr.bf16.mxu0 %v820_v4  ;;  %v715_v12 = vpack.c.bf16 %v90_v10, %v89_v9  ;;  %v91_v13 = vld [vmem:[%s1109_s4 + $0x30] sm:$0xff]  ;;  %v92_v14 = vld [vmem:[%s1109_s4 + $0x38] sm:$0xff]  ;;  %v823_v16 = vmov 0.0   ;;  %v175_v17 = vld [vmem:[%s1111_s6] sm:$0xff]  ;;  %vm100_vm1 = vcmask 523264   ;;  %vm281_vm2 = vcmask 130048  }
   0xc   :  { %v718_v15 = vpack.c.bf16 %v92_v14, %v91_v13  ;;  %641 = vmatprep.mubr.msk.f32.mxu0 %vm822_vm0, %v823_v16  ;;  %660 = vmatprep.mubr.msk.f32.mxu1 %vm822_vm0, %v823_v16  ;;  %v176_v18 = vld [vmem:[%s1111_s6 + $0x8] sm:$0xff]  ;;  %v177_v19 = vld [vmem:[%s1111_s6 + $0x10] sm:$0xff]  ;;  %v178_v21 = vld [vmem:[%s1111_s6 + $0x18] sm:$0xff]  ;;  %s826_s30 = smov [#allocation4]  }
   0xd   :  { %768 = vset.pattern.permute.xlu0 %v821_v11  ;;  %v721_v20 = vpack.c.bf16 %v176_v18, %v175_v17  ;;  %v724_v22 = vpack.c.bf16 %v178_v21, %v177_v19  ;;  %v179_v23 = vld [vmem:[%s1111_s6 + $0x20] sm:$0xff]  ;;  %v180_v24 = vld [vmem:[%s1111_s6 + $0x28] sm:$0xff]  ;;  %v181_v36 = vld [vmem:[%s1111_s6 + $0x30] sm:$0xff]  ;;  %s557_s0 = sshll.u32 %s826_s30, 4  ;;  %s558_s0 = int_to_ptr.vmem [resolvable:$true] %s557_s0 }
   0xe   :  { %67 = vperm.xlu0 %768, %v52_v0   ;;  %713 = vmatpush3.bf16.msra.mxu0 %v712_v8  ;;  %v727_v25 = vpack.c.bf16 %v180_v24, %v179_v23  ;;  %v573_v27 = vld [vmem:[%s1107_s2] ss:$0 sm:$0xff]  ;;  %v574_v28 = vld [vmem:[%s1107_s2 + $0x1] ss:$0 sm:$0xff]  ;;  %v182_v37 = vld [vmem:[%s1111_s6 + $0x38] sm:$0xff]  ;;  %s824_s2 = smov 112  }
   0xf   :  { %714 = vmatprep.subr.bf16.mxu0 %v820_v4  ;;  %722 = vmatpush3.bf16.msra.mxu1 %v721_v20  ;;  %v575_v32 = vld [vmem:[%s1108_s3] ss:$0 sm:$0xff]  ;;  %v730_v38 = vpack.c.bf16 %v182_v37, %v181_v36  ;;  %v273_v50 = vld [vmem:[%s1113_s8 + $0x8] sm:$0xff]  ;;  %v358_v55 = vld [vmem:[%s1115_s10 + $0x10] sm:$0xff] }
  0x10   :  { %723 = vmatprep.subr.bf16.mxu1 %v820_v4  ;;  %v576_v39 = vld [vmem:[%s1110_s5] ss:$0 sm:$0xff]  ;;  %v357_v54 = vld [vmem:[%s1115_s10 + $0x8] sm:$0xff]  ;;  %v359_v57 = vld [vmem:[%s1115_s10 + $0x18] sm:$0xff] }
  0x11   :  { %v578_v44 = vld [vmem:[%s1112_s7] ss:$0 sm:$0xff]  ;;  %v739_v58 = vpack.c.bf16 %v359_v57, %v358_v55  ;;  %v361_v60 = vld [vmem:[%s1115_s10 + $0x28] sm:$0xff]  ;;  %v362_v5 = vld [vmem:[%s1115_s10 + $0x30] sm:$0xff] }
  0x12   :  { %716 = vmatpush3.bf16.msra.mxu0 %v715_v12  ;;  %v272_v49 = vld [vmem:[%s1113_s8] sm:$0xff]  ;;  %v363_v6 = vld [vmem:[%s1115_s10 + $0x38] sm:$0xff]  ;;  %v446_v9 = vld [vmem:[%s1117_s12 + $0x8] sm:$0xff] }
  0x13   :  { %717 = vmatprep.subr.bf16.mxu0 %v820_v4  ;;  %725 = vmatpush3.bf16.msra.mxu1 %v724_v22  ;;  %v733_v51 = vpack.c.bf16 %v273_v50, %v272_v49  ;;  %v356_v53 = vld [vmem:[%s1115_s10] sm:$0xff]  ;;  %v745_v7 = vpack.c.bf16 %v363_v6, %v362_v5  ;;  %v447_v10 = vld [vmem:[%s1117_s12 + $0x10] sm:$0xff]  ;;  %v448_v12 = vld [vmem:[%s1117_s12 + $0x18] sm:$0xff] }
  0x14   :  { %726 = vmatprep.subr.bf16.mxu1 %v820_v4  ;;  %v736_v56 = vpack.c.bf16 %v357_v54, %v356_v53  ;;  %v360_v59 = vld [vmem:[%s1115_s10 + $0x20] sm:$0xff]  ;;  %v751_v13 = vpack.c.bf16 %v448_v12, %v447_v10  ;;  %v451_v22 = vld [vmem:[%s1117_s12 + $0x30] sm:$0xff]  ;;  %v452_v23 = vld [vmem:[%s1117_s12 + $0x38] sm:$0xff] }
  0x15   :  { %v742_v61 = vpack.c.bf16 %v361_v60, %v360_v59  ;;  %v53_v63 = vld [vmem:[%s1106_s1] sm:$0xff]  ;;  %v757_v24 = vpack.c.bf16 %v452_v23, %v451_v22 }
  0x16   :  { %719 = vmatpush3.bf16.msra.mxu0 %v718_v15  ;;  %v445_v8 = vld [vmem:[%s1117_s12] sm:$0xff]  ;;  %v450_v15 = vld [vmem:[%s1117_s12 + $0x28] sm:$0xff] }
  0x17   :  { %732 = vmatprep.subr.bf16.mxu0 %v820_v4  ;;  %728 = vmatpush3.bf16.msra.mxu1 %v727_v25  ;;  %v748_v11 = vpack.c.bf16 %v446_v9, %v445_v8  ;;  %v449_v14 = vld [vmem:[%s1117_s12 + $0x20] sm:$0xff] }
  0x18   :  { %729 = vmatprep.subr.bf16.mxu1 %v820_v4  ;;  %v580_v17 = vld [vmem:[%s1114_s9] ss:$0 sm:$0xff]  ;;  %s825_s9 = smov [#allocation2]  }
  0x19   :  { %s547_s29 = sshll.u32 %s825_s9, 4  ;;  %s548_s29 = int_to_ptr.vmem [resolvable:$true] %s547_s29 }
  0x1a   :  { %s771_s6 = scalar_lea.vmem %s548_s29, 128  ;;  %p776_p1 = scmp.lt.s32.totalorder %s548_s29, %s548_s29 }
  0x1b   :  { %731 = vmatpush3.bf16.msra.mxu1 %v730_v38  ;;  %p772_p0 = scmp.ne.s32.totalorder %s548_s29, %s771_s6  ;;  %p777_p2 = scmp.lt.s32.totalorder %s771_s6, %s771_s6 }
  0x1c   :  { %735 = vmatprep.subr.bf16.mxu1 %v820_v4 }
  0x1d   :  { %p778_p3 = por %p777_p2, %p776_p1 }
  0x1f   :  { %p779_p4 = pnand %p778_p3, %p772_p0 }
  0x88   :  { %v58_v26 = vpop.permute.xlu0 %57 }
  0x89   :  { %v64_v30 = vmul.f32 %v573_v27, %v58_v26 }
  0x8d   :  { %v68_v29 = vpop.permute.xlu0 %67 }
  0x8e   :  { %v74_v31 = vmul.f32 %v574_v28, %v68_v29 }
  0x90   :  { %v75_v33 = vadd.f32 %v74_v31, %v64_v30 }
  0x92   :  { %v83_v34 = vadd.f32 %v575_v32, %v75_v33 }
  0x94   :  { %v84_v35 = vmax.f32 %v83_v34, 0.0 }
  0x96   :  { %642 = vmatmul.mubr.msk.f32.vlgmr.msra.gmra.mrb[0].mxu0 %vm100_vm1, %v84_v35 }
  0x97   :  { %667 = vmatprep.mubr.msk.f32.mxu0 %vm822_vm0, %v823_v16  ;;  %734 = vmatpush3.bf16.msra.mxu0 %v733_v51 }
  0x98   :  { %747 = vmatprep.subr.bf16.mxu0 %v820_v4 }
 0x169   :  { %v170_v40 = vpop.f32.mrb[0].mxu0 }
 0x16a   :  { %v171_v41 = vadd.f32 %v576_v39, %v170_v40  ;;  %v643_v42 = vpop.f32.mrb[1].mxu0 }
 0x16c   :  { %v174_v43 = vmax.f32 %v171_v41, 0.0 }
 0x16e   :  { %661 = vmatmul.mubr.msk.f32.vlgmr.msra.gmra.mrb[0].mxu1 %vm100_vm1, %v174_v43 }
 0x16f   :  { %686 = vmatprep.mubr.msk.f32.mxu1 %vm822_vm0, %v823_v16  ;;  %737 = vmatpush3.bf16.msra.mxu1 %v736_v56 }
 0x170   :  { %738 = vmatprep.subr.bf16.mxu1 %v820_v4 }
 0x173   :  { %740 = vmatpush3.bf16.msra.mxu1 %v739_v58 }
 0x174   :  { %741 = vmatprep.subr.bf16.mxu1 %v820_v4 }
 0x177   :  { %743 = vmatpush3.bf16.msra.mxu1 %v742_v61 }
 0x178   :  { %744 = vmatprep.subr.bf16.mxu1 %v820_v4 }
 0x17b   :  { %746 = vmatpush3.bf16.msra.mxu1 %v745_v7 }
 0x241   :  { %v259_v45 = vpop.f32.mrb[0].mxu1 }
 0x242   :  { %v260_v46 = vadd.f32 %v578_v44, %v259_v45  ;;  %v662_v47 = vpop.f32.mrb[1].mxu1 }
 0x244   :  { %v263_v48 = vmul.f32 0.5, %v260_v46  ;;  %533 = vst.msk [vmem:[#allocation2] sm:$0xff] %vm281_vm2, %v260_v46 }
 0x246   :  { %v264_v52 = vmul.f32 1.442695, %v263_v48 }
 0x248   :  { %769 = vpow2.f32 %v264_v52 }
 0x252   :  { %v770_v62 = vpop.eup %769 }
 0x253   :  { %267 = vrot.lane.b32.xlu1 %v770_v62, %s824_s2 }
 0x257   :  { %535 = vrot.lane.b32.xlu1 %v260_v46, %s824_s2 }
 0x2c5   :  { %v268_v0 = vpop.permute.xlu1 %267 }
 0x2c6   :  { %v270_v1 = vmul.f32 %v268_v0, %v53_v63 }
 0x2c8   :  { %v271_v2 = vadd.f32 %v270_v1, %v260_v46 }
 0x2c9   :  { %v536_v3 = vpop.permute.xlu1 %535 }
 0x2ca   :  { %538 = vst.msk [vmem:[#allocation4] sm:$0xff] %vm281_vm2, %v536_v3  ;;  %668 = vmatmul.mubr.msk.f32.vlgmr.msra.gmra.mrb[2].mxu0 %vm281_vm2, %v271_v2 }
 0x2cb   :  { %705 = vmatprep.mubr.msk.f32.mxu0 %vm822_vm0, %v823_v16  ;;  %749 = vmatpush3.bf16.msra.mxu0 %v748_v11  ;;  %v754_v16 = vpack.c.bf16 %v450_v15, %v449_v14 }
 0x2cc   :  { %750 = vmatprep.subr.bf16.mxu0 %v820_v4 }
 0x2cf   :  { %752 = vmatpush3.bf16.msra.mxu0 %v751_v13 }
 0x2d0   :  { %753 = vmatprep.subr.bf16.mxu0 %v820_v4 }
 0x2d3   :  { %755 = vmatpush3.bf16.msra.mxu0 %v754_v16 }
 0x2d4   :  { %756 = vmatprep.subr.bf16.mxu0 %v820_v4  ;;  %v582_v4 = vld [vmem:[%s1116_s11] ss:$0 sm:$0xff] }
 0x2d7   :  { %758 = vmatpush3.bf16.msra.mxu0 %v757_v24 }
 0x39d   :  { %v351_v18 = vpop.f32.mrb[2].mxu0 }
 0x39e   :  { %v352_v19 = vadd.f32 %v580_v17, %v351_v18  ;;  %v669_v20 = vpop.f32.mrb[3].mxu0 }
 0x3a0   :  { %v355_v21 = vmax.f32 %v352_v19, 0.0 }
 0x3a2   :  { %687 = vmatmul.mubr.msk.f32.vlgmr.msra.gmra.mrb[2].mxu1 %vm100_vm1, %v355_v21 }
 0x475   :  { %v440_v25 = vpop.f32.mrb[2].mxu1 }
 0x476   :  { %v441_v26 = vadd.f32 %v582_v4, %v440_v25  ;;  %v688_v27 = vpop.f32.mrb[3].mxu1 }
 0x478   :  { %v444_v28 = vmax.f32 %v441_v26, 0.0 }
 0x47a   :  { %706 = vmatmul.mubr.msk.f32.vlgmr.msra.gmra.mrb[4].mxu0 %vm100_vm1, %v444_v28 }
 0x47b   :  { %782 = shalt.err (!%p779_p4)
}
 0x47c   :  { %s783_s1 = scalar_lea.hbm %s1119_s14, 128 }
 0x47d   :  { %p784_p5 = scmp.ne.s32.totalorder %s1119_s14, %s783_s1  ;;  %p787_p6 = scmp.lt.u32.totalorder %s783_s1, %s1119_s14 }
 0x47f   :  { %p789_p7 = pnand %p787_p6, %p784_p5 }
 0x481   :  { %792 = shalt.err (!%p789_p7)
}
 0x482   :  { %550 = dma.vmem_to_hbm [thread:$0]  %s548_s29, 128, %s1119_s14, [#allocation3]  }
 0x483   :  { %s793_s21 = scalar_lea.vmem %s558_s0, 128  ;;  %p798_p9 = scmp.lt.s32.totalorder %s558_s0, %s558_s0 }
 0x484   :  { %p794_p8 = scmp.ne.s32.totalorder %s558_s0, %s793_s21  ;;  %p799_p10 = scmp.lt.s32.totalorder %s793_s21, %s793_s21 }
 0x486   :  { %p800_p11 = por %p799_p10, %p798_p9 }
 0x488   :  { %p801_p12 = pnand %p800_p11, %p794_p8 }
 0x48a   :  { %804 = shalt.err (!%p801_p12)
}
 0x48b   :  { %s805_s23 = scalar_lea.hbm %s1120_s15, 128 }
 0x48c   :  { %p806_p13 = scmp.ne.s32.totalorder %s1120_s15, %s805_s23  ;;  %p809_p0 = scmp.lt.u32.totalorder %s805_s23, %s1120_s15 }
 0x48e   :  { %p811_p1 = pnand %p809_p0, %p806_p13 }
 0x490   :  { %814 = shalt.err (!%p811_p1)
}
 0x491   :  { %560 = dma.vmem_to_hbm [thread:$0]  %s558_s0, 128, %s1120_s15, [#allocation5]   ;;  %v584_v29 = vld [vmem:[%s1118_s13] ss:$0 sm:$0xff]  ;;  %vm539_vm3 = vcmask 15360  }
 0x54d   :  { %v529_v30 = vpop.f32.mrb[4].mxu0 }
 0x54e   :  { %v530_v31 = vadd.f32 %v584_v29, %v529_v30  ;;  %v707_v32 = vpop.f32.mrb[5].mxu0 }
 0x550   :  { %540 = vst.msk [vmem:[%s1121_s16] sm:$0xff] %vm539_vm3, %v530_v31 }
 0x551   :  { %815 = dma.done.wait [#allocation3], 128  }
 0x552   :  { %816 = vsyncadd [#allocation3], 4294967168 }
 0x553   :  { %817 = dma.done.wait [#allocation5], 128  }
 0x554   :  { %818 = vsyncadd [#allocation5], 4294967168 }
 0x555   :  { %571 = vsyncpa [#allocation3], 1 }
 0x556   :  { %572 = vsyncpa [#allocation5], 1 }

</bundles_post_ra>
